<compile_context>
chip_gen: v6e
topology: v6e:2x2x1
jax: 0.10.0
libtpu: 0.0.40
codegen_flags: <defaults>
</compile_context>

<pallas_src>
import functools
import numpy as np
import jax
import jax.numpy as jnp
from jax import lax
from jax.experimental import pallas as pl
from jax.experimental.pallas import tpu as pltpu


def _wnll_kernel(pred_ref, tgt_ref, w_ref, out_ref, acc_ref, *, weighted):
    step = pl.program_id(0)

    @pl.when(step == 0)
    def _init():
        acc_ref[0] = jnp.float32(0.0)
        acc_ref[1] = jnp.float32(0.0)

    pred = pred_ref[...]                                    # (bn, C) f32 log-probs
    tgt = tgt_ref[...]                                      # (bn, 1) int32 (-1 = padding row)
    cls = lax.broadcasted_iota(jnp.int32, pred.shape, 1)    # (bn, C) class ids
    sel = cls == tgt                                        # one-hot of target per row
    w_sel = jnp.where(sel, w_ref[...], jnp.float32(0.0))    # weight[target_i] at target col
    acc_ref[0] += jnp.sum(w_sel * pred)                     # sum_i w[t_i] * pred[i, t_i]
    acc_ref[1] += jnp.sum(w_sel)                            # sum_i w[t_i]

    @pl.when(step == pl.num_programs(0) - 1)
    def _finalize():
        loss = -acc_ref[0]
        if weighted:                                        # static specialization
            loss = loss / acc_ref[1]
        out_ref[0, 0] = loss


def weighted_nll_loss(pred, target, weight=None, block_rows=512):
    """loss = NLLLoss(weight, reduction='sum')(pred, target) [/ sum(weight[target])]."""
    N, C = pred.shape
    weighted = weight is not None
    w = (jnp.ones((C,), jnp.float32) if weight is None
         else jnp.asarray(weight, jnp.float32))

    bn = min(block_rows, N)
    bn = max(8, (bn // 8) * 8)                 # sublane-aligned row blocks
    n_pad = -(-N // bn) * bn
    pred_f = pred.astype(jnp.float32)
    tgt = jnp.asarray(target, jnp.int32)
    if n_pad != N:
        # padded rows get target = -1 -> match no class -> contribute 0 to both sums
        pred_f = jnp.pad(pred_f, ((0, n_pad - N), (0, 0)))
        tgt = jnp.pad(tgt, (0, n_pad - N), constant_values=-1)
    tgt2d = tgt.reshape(n_pad, 1)
    w2d = w.reshape(1, C)

    grid = (n_pad // bn,)
    kernel = functools.partial(_wnll_kernel, weighted=weighted)
    out = pl.pallas_call(
        kernel,
        out_shape=jax.ShapeDtypeStruct((1, 1), jnp.float32),
        grid_spec=pltpu.PrefetchScalarGridSpec(
            num_scalar_prefetch=0,
            grid=grid,
            in_specs=[
                pl.BlockSpec((bn, C), lambda i: (i, 0)),    # pred rows
                pl.BlockSpec((bn, 1), lambda i: (i, 0)),    # targets
                pl.BlockSpec((1, C), lambda i: (0, 0)),     # class weights (resident)
            ],
            out_specs=pl.BlockSpec(memory_space=pltpu.MemorySpace.SMEM),
            scratch_shapes=[pltpu.SMEM((2,), jnp.float32)],
        ),
        compiler_params=pltpu.CompilerParams(
            dimension_semantics=("arbitrary",)),            # row axis is a reduction
    )(pred_f, tgt2d, w2d)
    return out[0, 0]


def reference_forward(pred, target, weight=None):
    """Pure-JAX mirror of the PyTorch forward."""
    picked = pred[jnp.arange(pred.shape[0]), target]
    if weight is None:
        return -jnp.sum(picked)
    w = weight[target]
    return -jnp.sum(w * picked) / jnp.sum(w)


if __name__ == "__main__":
    B, T, C = 2, 8, 7                  # batch, seq, n_classes (MELD emotions)
    N = B * T
    key = jax.random.PRNGKey(0)
    k1, k2, k3 = jax.random.split(key, 3)
    logits = jax.random.normal(k1, (N, C), dtype=jnp.float32)
    pred = jax.nn.log_softmax(logits, axis=-1)              # NLLLoss expects log-probs
    target = jax.random.randint(k2, (N,), 0, C, dtype=jnp.int32)
    weight = jax.random.uniform(k3, (C,), jnp.float32, minval=0.5, maxval=2.0)

    # weighted path: whole problem in one block (grid collapsed at toy sizes)
    loss_w = jax.block_until_ready(weighted_nll_loss(pred, target, weight))
    ref_w = reference_forward(pred, target, weight)
    np.testing.assert_allclose(np.asarray(loss_w), np.asarray(ref_w),
                               rtol=1e-5, atol=1e-5)

    # unweighted path (weight=None): multi-step grid exercises SMEM accumulation
    loss_u = jax.block_until_ready(weighted_nll_loss(pred, target, None,
                                                     block_rows=8))
    ref_u = reference_forward(pred, target, None)
    np.testing.assert_allclose(np.asarray(loss_u), np.asarray(ref_u),
                               rtol=1e-5, atol=1e-5)

    print("KERNEL_OK")
</pallas_src>

<mosaic_0001>
module attributes {stable_mosaic.version = 11 : i64} {
  func.func @_wnll_kernel(%arg0: i32, %arg1: memref<16x7xf32, #tpu.memory_space<vmem>>, %arg2: memref<16x1xi32, #tpu.memory_space<vmem>>, %arg3: memref<1x7xf32, #tpu.memory_space<vmem>>, %arg4: memref<1x1xf32, #tpu.memory_space<smem>>, %arg5: memref<2xf32, #tpu.memory_space<smem>>) attributes {dimension_semantics = [#tpu.dimension_semantics<arbitrary>], iteration_bounds = array<i64: 1>, scalar_prefetch = 0 : i64, scratch_operands = 1 : i64, tpu.core_type = #tpu.core_type<tc>, window_params = [{transform_indices = @transform_0, window_bounds = array<i64: 16, 7>}, {transform_indices = @transform_1, window_bounds = array<i64: 16, 1>}, {pipeline_mode = #tpu.pipeline_mode<synchronous>, transform_indices = @transform_2, window_bounds = array<i64: 1, 7>}, {transform_indices = @transform_3, window_bounds = array<i64: 1, 1>}]} {
    %c0_i32 = arith.constant 0 : i32
    %0 = arith.cmpi eq, %arg0, %c0_i32 : i32
    %1 = arith.extui %0 : i1 to i32
    %c0_i32_0 = arith.constant 0 : i32
    %2 = arith.cmpi ne, %1, %c0_i32_0 : i32
    scf.if %2 {
      %cst_13 = arith.constant 0.000000e+00 : f32
      %c0_14 = arith.constant 0 : index
      %31 = memref.load %arg5[%c0_14] : memref<2xf32, #tpu.memory_space<smem>>
      memref.store %cst_13, %arg5[%c0_14] : memref<2xf32, #tpu.memory_space<smem>>
      %cst_15 = arith.constant 0.000000e+00 : f32
      %c1_16 = arith.constant 1 : index
      %32 = memref.load %arg5[%c1_16] : memref<2xf32, #tpu.memory_space<smem>>
      memref.store %cst_15, %arg5[%c1_16] : memref<2xf32, #tpu.memory_space<smem>>
    } else {
    }
    %c0 = arith.constant 0 : index
    %c0_1 = arith.constant 0 : index
    %3 = vector.load %arg1[%c0, %c0_1] : memref<16x7xf32, #tpu.memory_space<vmem>>, vector<16x7xf32>
    %c0_2 = arith.constant 0 : index
    %c0_3 = arith.constant 0 : index
    %4 = vector.load %arg2[%c0_2, %c0_3] : memref<16x1xi32, #tpu.memory_space<vmem>>, vector<16x1xi32>
    %5 = tpu.iota {dimensions = array<i32: 1>} : vector<16x7xi32>
    %6 = vector.broadcast %4 : vector<16x1xi32> to vector<16x7xi32>
    %7 = arith.cmpi eq, %5, %6 : vector<16x7xi32>
    %c0_4 = arith.constant 0 : index
    %c0_5 = arith.constant 0 : index
    %8 = vector.load %arg3[%c0_4, %c0_5] : memref<1x7xf32, #tpu.memory_space<vmem>>, vector<1x7xf32>
    %cst = arith.constant 0.000000e+00 : f32
    %9 = vector.shape_cast %8 : vector<1x7xf32> to vector<1x7xf32>
    %10 = vector.broadcast %9 : vector<1x7xf32> to vector<16x7xf32>
    %11 = vector.broadcast %cst : f32 to vector<16x7xf32>
    %12 = arith.select %7, %10, %11 : vector<16x7xi1>, vector<16x7xf32>
    %c0_6 = arith.constant 0 : index
    %13 = memref.load %arg5[%c0_6] : memref<2xf32, #tpu.memory_space<smem>>
    %14 = arith.mulf %12, %3 : vector<16x7xf32>
    %15 = vector.shape_cast %14 : vector<16x7xf32> to vector<1x16x7xf32>
    %cst_7 = arith.constant dense<0.000000e+00> : vector<1xf32>
    %16 = vector.multi_reduction <add>, %15, %cst_7 [1, 2] : vector<1x16x7xf32> to vector<1xf32>
    %17 = vector.shape_cast %16 : vector<1xf32> to vector<1x1x1xf32>
    %18 = vector.extract %17[0, 0, 0] : f32 from vector<1x1x1xf32>
    %19 = arith.addf %13, %18 : f32
    %c0_8 = arith.constant 0 : index
    %20 = memref.load %arg5[%c0_8] : memref<2xf32, #tpu.memory_space<smem>>
    memref.store %19, %arg5[%c0_8] : memref<2xf32, #tpu.memory_space<smem>>
    %c1 = arith.constant 1 : index
    %21 = memref.load %arg5[%c1] : memref<2xf32, #tpu.memory_space<smem>>
    %22 = vector.shape_cast %12 : vector<16x7xf32> to vector<1x16x7xf32>
    %cst_9 = arith.constant dense<0.000000e+00> : vector<1xf32>
    %23 = vector.multi_reduction <add>, %22, %cst_9 [1, 2] : vector<1x16x7xf32> to vector<1xf32>
    %24 = vector.shape_cast %23 : vector<1xf32> to vector<1x1x1xf32>
    %25 = vector.extract %24[0, 0, 0] : f32 from vector<1x1x1xf32>
    %26 = arith.addf %21, %25 : f32
    %c1_10 = arith.constant 1 : index
    %27 = memref.load %arg5[%c1_10] : memref<2xf32, #tpu.memory_space<smem>>
    memref.store %26, %arg5[%c1_10] : memref<2xf32, #tpu.memory_space<smem>>
    %c0_i32_11 = arith.constant 0 : i32
    %28 = arith.cmpi eq, %arg0, %c0_i32_11 : i32
    %29 = arith.extui %28 : i1 to i32
    %c0_i32_12 = arith.constant 0 : i32
    %30 = arith.cmpi ne, %29, %c0_i32_12 : i32
    scf.if %30 {
      %c0_13 = arith.constant 0 : index
      %31 = memref.load %arg5[%c0_13] : memref<2xf32, #tpu.memory_space<smem>>
      %cst_14 = arith.constant 0.000000e+00 : f32
      %32 = arith.subf %cst_14, %31 : f32
      %c1_15 = arith.constant 1 : index
      %33 = memref.load %arg5[%c1_15] : memref<2xf32, #tpu.memory_space<smem>>
      %34 = arith.divf %32, %33 : f32
      %c0_16 = arith.constant 0 : index
      %c0_17 = arith.constant 0 : index
      %35 = memref.load %arg4[%c0_16, %c0_17] : memref<1x1xf32, #tpu.memory_space<smem>>
      memref.store %34, %arg4[%c0_16, %c0_17] : memref<1x1xf32, #tpu.memory_space<smem>>
    } else {
    }
    return
  }
  func.func @transform_0(%arg0: i32) -> (i32, i32) {
    %c0_i32 = arith.constant 0 : i32
    %c0_i32_0 = arith.constant 0 : i32
    return %arg0, %c0_i32 : i32, i32
  }
  func.func @transform_1(%arg0: i32) -> (i32, i32) {
    %c0_i32 = arith.constant 0 : i32
    %c0_i32_0 = arith.constant 0 : i32
    return %arg0, %c0_i32 : i32, i32
  }
  func.func @transform_2(%arg0: i32) -> (i32, i32) {
    %c0_i32 = arith.constant 0 : i32
    %c0_i32_0 = arith.constant 0 : i32
    %c0_i32_1 = arith.constant 0 : i32
    return %c0_i32, %c0_i32_0 : i32, i32
  }
  func.func @transform_3(%arg0: i32) -> (i32, i32) {
    %c0_i32 = arith.constant 0 : i32
    %c0_i32_0 = arith.constant 0 : i32
    %c0_i32_1 = arith.constant 0 : i32
    return %c0_i32, %c0_i32_0 : i32, i32
  }
}

</mosaic_0001>

<bundles_post_ra>
// kernel: tpu_custom_call.1
= control target key start
LH: loop header
LB: loop body
LE: loop exit
PB: predicated region body
PF: predicated region fallthrough
CT: control target
= control target key end

     0   :  { %v130_v1 = vmov 0   ;;  %s170_s0 = inlined_call_operand.vmem [shape: f32[16,7], index: 0, kind: input, shape index: {}]   ;;  %s171_s1 = inlined_call_operand.vmem [shape: s32[16,1], index: 1, kind: input, shape index: {}]   ;;  %s172_s2 = inlined_call_operand.vmem [shape: f32[1,7], index: 2, kind: input, shape index: {}]   ;;  %s173_s3 = inlined_call_operand.hbm [shape: f32[1,1], index: 3, kind: output, shape index: {}]  }
   0x1   :  { %v25_v0 = vld [vmem:[%s171_s1] sm:$0xff]  ;;  %117 = vset.pattern.permute.xlu0 %v130_v1 }
   0x2   :  { %8 = vsyncpa [#allocation4], 0  ;;  %30 = vperm.xlu0 %117, %v25_v0   ;;  %v26_v2 = vld [vmem:[%s171_s1 + $0x8] sm:$0xff]  ;;  %v27_v3 = vlaneseq  ;;  %v106_v5 = vld [vmem:[%s172_s2] ss:$0 sm:$0xff]  ;;  %vm49_vm2 = vcmask 56320  }
   0x3   :  { %v23_v7 = vld [vmem:[%s170_s0] sm:$0xff]  ;;  %v24_v10 = vld [vmem:[%s170_s0 + $0x8] sm:$0xff]  ;;  %s131_s24 = smov [#allocation3]  }
   0x4   :  { %v28_v4 = vand.u32 127, %v27_v3 }
   0x6   :  { %33 = vperm.xlu0 %117, %v26_v2  }
  0x7d   :  { %v31_v6 = vpop.permute.xlu0 %30 }
  0x7e   :  { %vm35_vm0 = vcmp.eq.s32.totalorder %v28_v4, %v31_v6 }
  0x7f   :  { %v44_v8 = vsel %vm35_vm0, %v106_v5, 0.0 }
  0x80   :  { %v47_v11 = vmul.f32 %v44_v8, %v23_v7  ;;  %v66_v18 = vsel %vm49_vm2, %v44_v8, 0.0 }
  0x81   :  { %v34_v9 = vpop.permute.xlu0 %33 }
  0x82   :  { %vm36_vm1 = vcmp.eq.s32.totalorder %v28_v4, %v34_v9  ;;  %v50_v14 = vsel %vm49_vm2, %v47_v11, 0.0 }
  0x83   :  { %v45_v12 = vsel %vm36_vm1, %v106_v5, 0.0 }
  0x84   :  { %v48_v13 = vmul.f32 %v45_v12, %v24_v10  ;;  %v67_v17 = vsel %vm49_vm2, %v45_v12, 0.0 }
  0x85   :  { %v68_v19 = vadd.f32 %v67_v17, %v66_v18 }
  0x86   :  { %v51_v15 = vsel %vm49_vm2, %v48_v13, 0.0 }
  0x87   :  { %v52_v16 = vadd.f32 %v51_v15, %v50_v14 }
  0x89   :  { %53 = vadd.xlane.f32.xlu1 %v52_v16 }
  0x8d   :  { %69 = vadd.xlane.f32.xlu1 %v68_v19 }
 0x112   :  { %v54_v20 = vpop.xlane.xlu1 %53 }
 0x113   :  { %v55_v21 = vrot.slane %v54_v20, 4 }
 0x115   :  { %v56_v22 = vadd.f32 %v55_v21, %v54_v20 }
 0x116   :  { %v70_v23 = vpop.xlane.xlu1 %69 }
 0x117   :  { %v57_v24 = vrot.slane %v56_v22, 2  ;;  %v71_v25 = vrot.slane %v70_v23, 4 }
 0x119   :  { %v72_v26 = vadd.f32 %v71_v25, %v70_v23  ;;  %v58_v27 = vadd.f32 %v57_v24, %v56_v22 }
 0x11b   :  { %v73_v28 = vrot.slane %v72_v26, 2  ;;  %v59_v29 = vrot.slane %v58_v27, 1 }
 0x11d   :  { %v74_v30 = vadd.f32 %v73_v28, %v72_v26  ;;  %v60_v31 = vadd.f32 %v59_v29, %v58_v27 }
 0x11f   :  { %109 = vpush %v60_v31  ;;  %v75_v32 = vrot.slane %v74_v30, 1 }
 0x121   :  { %v76_v33 = vadd.f32 %v75_v32, %v74_v30 }
 0x123   :  { %111 = vpush %v76_v33 }
 0x150   :  { %s110_s0 = spop %109 }
 0x151   :  { %s85_s2 = ssub.f32 0.0, %s110_s0 }
 0x154   :  { %s112_s1 = spop %111 }
 0x155   :  { %v87_v34 = vstv %s112_s1 }
 0x156   :  { %118 = vrcp.f32 %v87_v34 }
 0x163   :  { %v119_v35 = vpop.eup %118 }
 0x164   :  { %113 = vpush %v119_v35 }
 0x195   :  { %s114_s22 = spop %113 }
 0x196   :  { %s90_s23 = smul.f32 %s114_s22, %s85_s2 }
 0x198   :  { %92 = sst [smem:[#allocation3]] %s90_s23 }
 0x199   :  { %100 = dma.smem_to_hbm %s131_s24, 16, %s173_s3, [#allocation4]  }
 0x19a   :  { %128 = dma.done.wait [#allocation4], 16  }
 0x19b   :  { %129 = vsyncadd [#allocation4], 4294967280 }
 0x19c   :  { %104 = sfence }
 0x19d   :  { %105 = vsyncpa [#allocation4], 1 }

</bundles_post_ra>
